<compile_context>
chip_gen: v6e
topology: v6e:2x2x1
jax: 0.10.0
libtpu: 0.0.40
codegen_flags: <defaults>
</compile_context>

<pallas_src>
import functools

import jax
import jax.numpy as jnp
from jax.experimental import pallas as pl
from jax.experimental.pallas import tpu as pltpu


_LANES = 512          # lane-dense last dim (multiple of 128 -> unmasked vst)
_MAX_BLOCK_ROWS = 256 # 256 x 512 x 4B = 512 KiB per buffer; fits all chips


def _round_up(x, m):
    return ((x + m - 1) // m) * m


def _unk_kernel_hw_prng(seed_ref, x_ref, o_ref, *, threshold, unknown_idx):
    """TPU path: draw random bits with the hardware PRNG inside the kernel."""
    # Decorrelate tiles: mix the grid position into the seed.
    pltpu.prng_seed(seed_ref[0], pl.program_id(0))
    bits = pltpu.bitcast(pltpu.prng_random_bits(x_ref.shape), jnp.uint32)
    o_ref[...] = jnp.where(
        bits < jnp.uint32(threshold), jnp.int32(unknown_idx), x_ref[...]
    )


def _unk_kernel_bits(x_ref, bits_ref, o_ref, *, threshold, unknown_idx):
    """Portable path: random bits are precomputed and passed in."""
    o_ref[...] = jnp.where(
        bits_ref[...] < jnp.uint32(threshold), jnp.int32(unknown_idx), x_ref[...]
    )


def unknown_dropout(tokens, key, *, unknown_idx, prob, training=True):
    """Randomly replace token ids with `unknown_idx` at rate `prob` (training only)."""
    if not training or prob <= 0.0:
        return tokens  # identity, mirrors the PyTorch eval path

    # prob quantized on a 1/2^32 grid via an unsigned integer threshold.
    threshold = int(round(float(prob) * (1 << 32)))
    if threshold >= (1 << 32):
        return jnp.full_like(tokens, unknown_idx)
    if threshold <= 0:
        return tokens

    orig_shape = tokens.shape
    orig_dtype = tokens.dtype

    # Lane-dense layout: flatten, pad, reshape to (rows_padded, _LANES).
    flat = tokens.reshape(-1).astype(jnp.int32)
    n = flat.shape[0]
    rows = _round_up(-(-n // _LANES), 8)              # rows, multiple of 8
    block_rows = min(_MAX_BLOCK_ROWS, rows)
    rows_padded = _round_up(rows, block_rows)
    n_padded = rows_padded * _LANES
    if n_padded != n:
        flat = jnp.pad(flat, (0, n_padded - n))
    x2d = flat.reshape(rows_padded, _LANES)

    grid = (rows_padded // block_rows,)
    out_shape = jax.ShapeDtypeStruct((rows_padded, _LANES), jnp.int32)

    if jax.default_backend() == "tpu":
        # In-kernel hardware PRNG: only the tokens are read from HBM.
        seed = jax.random.randint(key, (1,), 0, 2**31 - 1, dtype=jnp.int32)
        kernel = functools.partial(
            _unk_kernel_hw_prng, threshold=threshold, unknown_idx=int(unknown_idx)
        )
        out2d = pl.pallas_call(
            kernel,
            out_shape=out_shape,
            grid_spec=pltpu.PrefetchScalarGridSpec(
                num_scalar_prefetch=1,
                grid=grid,
                in_specs=[
                    pl.BlockSpec((block_rows, _LANES), lambda i, seed: (i, 0)),
                ],
                out_specs=pl.BlockSpec((block_rows, _LANES), lambda i, seed: (i, 0)),
            ),
            compiler_params=pltpu.CompilerParams(
                dimension_semantics=("parallel",),
            ),
        )(seed, x2d)
    else:
        # TODO(synk): pltpu.prng_seed has no CPU/interpret lowering; fall back
        # to host-generated random bits streamed as a second kernel input.
        bits = jax.random.bits(key, (rows_padded, _LANES), dtype=jnp.uint32)
        kernel = functools.partial(
            _unk_kernel_bits, threshold=threshold, unknown_idx=int(unknown_idx)
        )
        blk = pl.BlockSpec((block_rows, _LANES), lambda i: (i, 0))
        out2d = pl.pallas_call(
            kernel,
            out_shape=out_shape,
            grid=grid,
            in_specs=[blk, blk],
            out_specs=blk,
        )(x2d, bits)

    out = out2d.reshape(-1)[:n].reshape(orig_shape).astype(orig_dtype)
    return out


if __name__ == "__main__":
    root = jax.random.PRNGKey(0)
    k_tok, k_drop = jax.random.split(root)

    # Small, TPU-friendly token grid: batch=8 (sublanes), seq=128 (lanes).
    B, S = 8, 128
    VOCAB = 1000
    UNK_IDX = 3
    PROB = 0.25

    tokens = jax.random.randint(k_tok, (B, S), minval=10, maxval=VOCAB, dtype=jnp.int32)

    out = unknown_dropout(tokens, k_drop, unknown_idx=UNK_IDX, prob=PROB, training=True)
    out = jax.block_until_ready(out)

    assert out.shape == tokens.shape and out.dtype == tokens.dtype

    # Every position is either unchanged or the unknown index, and the
    # replacement rate is roughly PROB.
    unchanged = out == tokens
    replaced = out == UNK_IDX
    assert bool(jnp.all(unchanged | replaced)), "positions must be original or UNK"
    rate = float(jnp.mean(replaced.astype(jnp.float32)))
    assert 0.05 < rate < 0.6, f"replacement rate {rate} implausible for p={PROB}"

    # Eval mode is an identity.
    out_eval = unknown_dropout(tokens, k_drop, unknown_idx=UNK_IDX, prob=PROB, training=False)
    assert bool(jnp.all(out_eval == tokens))

    print("KERNEL_OK")
</pallas_src>

<mosaic_0001>
module attributes {stable_mosaic.version = 11 : i64} {
  func.func @_unk_kernel_bits(%arg0: i32, %arg1: memref<8x512xi32, #tpu.memory_space<vmem>>, %arg2: memref<8x512xi32, #tpu.memory_space<vmem>>, %arg3: memref<8x512xi32, #tpu.memory_space<vmem>>) attributes {dimension_semantics = [#tpu.dimension_semantics<arbitrary>], iteration_bounds = array<i64: 1>, scalar_prefetch = 0 : i64, scratch_operands = 0 : i64, tpu.core_type = #tpu.core_type<tc>, window_params = [{transform_indices = @transform_0, window_bounds = array<i64: 8, 512>}, {transform_indices = @transform_1, window_bounds = array<i64: 8, 512>}, {transform_indices = @transform_2, window_bounds = array<i64: 8, 512>}]} {
    %c0 = arith.constant 0 : index
    %c0_0 = arith.constant 0 : index
    %0 = vector.load %arg2[%c0, %c0_0] : memref<8x512xi32, #tpu.memory_space<vmem>>, vector<8x512xi32>
    %c1073741824_i32 = arith.constant 1073741824 : i32
    %1 = vector.broadcast %c1073741824_i32 : i32 to vector<8x512xi32>
    %2 = arith.cmpi ult, %0, %1 : vector<8x512xi32>
    %c0_1 = arith.constant 0 : index
    %c0_2 = arith.constant 0 : index
    %3 = vector.load %arg1[%c0_1, %c0_2] : memref<8x512xi32, #tpu.memory_space<vmem>>, vector<8x512xi32>
    %c3_i32 = arith.constant 3 : i32
    %4 = vector.broadcast %c3_i32 : i32 to vector<8x512xi32>
    %5 = arith.select %2, %4, %3 : vector<8x512xi1>, vector<8x512xi32>
    %c0_3 = arith.constant 0 : index
    %c0_4 = arith.constant 0 : index
    %6 = vector.load %arg3[%c0_3, %c0_4] : memref<8x512xi32, #tpu.memory_space<vmem>>, vector<8x512xi32>
    tpu.vector_store %arg3[%c0_3, %c0_4], %5 {strides = array<i32>} : memref<8x512xi32, #tpu.memory_space<vmem>>, vector<8x512xi32>,
    return
  }
  func.func @transform_0(%arg0: i32) -> (i32, i32) {
    %c0_i32 = arith.constant 0 : i32
    %c0_i32_0 = arith.constant 0 : i32
    return %arg0, %c0_i32 : i32, i32
  }
  func.func @transform_1(%arg0: i32) -> (i32, i32) {
    %c0_i32 = arith.constant 0 : i32
    %c0_i32_0 = arith.constant 0 : i32
    return %arg0, %c0_i32 : i32, i32
  }
  func.func @transform_2(%arg0: i32) -> (i32, i32) {
    %c0_i32 = arith.constant 0 : i32
    %c0_i32_0 = arith.constant 0 : i32
    return %arg0, %c0_i32 : i32, i32
  }
}

</mosaic_0001>

<bundles_post_ra>
// kernel: tpu_custom_call.1
= control target key start
LH: loop header
LB: loop body
LE: loop exit
PB: predicated region body
PF: predicated region fallthrough
CT: control target
= control target key end

     0   :  { %7 = vsyncpa [#allocation3], 0  ;;  %s168_s0 = inlined_call_operand.hbm [shape: s32[8,512], index: 0, kind: input, shape index: {}]   ;;  %s169_s1 = inlined_call_operand.hbm [shape: u32[8,512], index: 1, kind: input, shape index: {}]   ;;  %s170_s2 = inlined_call_operand.hbm [shape: s32[8,512], index: 2, kind: output, shape index: {}]  }
   0x1   :  { %8 = vsyncpa [#allocation6], 0 }
   0x2   :  { %9 = vsyncpa [#allocation4], 0  ;;  %s141_s9 = smov [#allocation2]   ;;  %s142_s11 = smov [#allocation5]  }
   0x3   :  { %s16_s10 = sshll.u32 %s141_s9, 4  ;;  %s26_s12 = sshll.u32 %s142_s11, 4  ;;  %s17_s10 = int_to_ptr.vmem [resolvable:$true] %s16_s10  ;;  %s27_s12 = int_to_ptr.vmem [resolvable:$true] %s26_s12 }
   0x4   :  { %s83_s13 = scalar_lea.vmem %s17_s10, 512  ;;  %p88_p1 = scmp.lt.s32.totalorder %s17_s10, %s17_s10 }
   0x5   :  { %p84_p0 = scmp.ne.s32.totalorder %s17_s10, %s83_s13  ;;  %p89_p2 = scmp.lt.s32.totalorder %s83_s13, %s83_s13 }
   0x7   :  { %p90_p3 = por %p89_p2, %p88_p1 }
   0x9   :  { %p91_p4 = pnand %p90_p3, %p84_p0 }
   0xb   :  { %94 = shalt.err (!%p91_p4)
}
   0xc   :  { %19 = dma.hbm_to_vmem [thread:$0]  %s168_s0, 512, %s17_s10, [#allocation3]  }
   0xd   :  { %s103_s16 = scalar_lea.vmem %s27_s12, 512  ;;  %p108_p6 = scmp.lt.s32.totalorder %s27_s12, %s27_s12 }
   0xe   :  { %p104_p5 = scmp.ne.s32.totalorder %s27_s12, %s103_s16  ;;  %p109_p7 = scmp.lt.s32.totalorder %s103_s16, %s103_s16 }
  0x10   :  { %p110_p8 = por %p109_p7, %p108_p6 }
  0x12   :  { %p111_p9 = pnand %p110_p8, %p104_p5 }
  0x14   :  { %114 = shalt.err (!%p111_p9)
}
  0x15   :  { %29 = dma.hbm_to_vmem [thread:$0]  %s169_s1, 512, %s27_s12, [#allocation6]  }
  0x16   :  { %135 = dma.done.wait [#allocation3], 512  }
  0x17   :  { %136 = vsyncadd [#allocation3], 4294966784 }
  0x18   :  { %137 = dma.done.wait [#allocation6], 512  }
  0x19   :  { %138 = vsyncadd [#allocation6], 4294966784  ;;  %v36_v0 = vld [vmem:[#allocation5] sm:$0xff]  ;;  %v37_v2 = vld [vmem:[#allocation5 + $0x8] sm:$0xff]  ;;  %s143_s19 = smov [#allocation7]  }
  0x1a   :  { %v44_v1 = vld [vmem:[#allocation2] sm:$0xff]  ;;  %s62_s0 = sshll.u32 %s143_s19, 4  ;;  %vm40_vm0 = vcmp.lt.u32.totalorder %v36_v0, 1073741824  ;;  %vm41_vm1 = vcmp.lt.u32.totalorder %v37_v2, 1073741824  ;;  %v45_v3 = vld [vmem:[#allocation2 + $0x8] sm:$0xff]  ;;  %v38_v4 = vld [vmem:[#allocation5 + $0x10] sm:$0xff]  ;;  %s63_s0 = int_to_ptr.vmem [resolvable:$true] %s62_s0 }
  0x1b   :  { %v46_v5 = vld [vmem:[#allocation2 + $0x10] sm:$0xff]  ;;  %v48_v6 = vsel %vm40_vm0, 3, %v44_v1  ;;  %v49_v7 = vsel %vm41_vm1, 3, %v45_v3  ;;  %vm42_vm2 = vcmp.lt.u32.totalorder %v38_v4, 1073741824  ;;  %v39_v8 = vld [vmem:[#allocation5 + $0x18] sm:$0xff]  ;;  %s115_s1 = scalar_lea.vmem %s63_s0, 512  ;;  %p120_p11 = scmp.lt.s32.totalorder %s63_s0, %s63_s0 }
  0x1c   :  { %v47_v9 = vld [vmem:[#allocation2 + $0x18] sm:$0xff]  ;;  %52 = vst [vmem:[#allocation7] sm:$0xff] %v48_v6  ;;  %53 = vst [vmem:[#allocation7 + $0x8] sm:$0xff] %v49_v7  ;;  %v50_v10 = vsel %vm42_vm2, 3, %v46_v5  ;;  %vm43_vm3 = vcmp.lt.u32.totalorder %v39_v8, 1073741824  ;;  %p116_p10 = scmp.ne.s32.totalorder %s63_s0, %s115_s1  ;;  %p121_p12 = scmp.lt.s32.totalorder %s115_s1, %s115_s1 }
  0x1d   :  { %54 = vst [vmem:[#allocation7 + $0x10] sm:$0xff] %v50_v10  ;;  %v51_v11 = vsel %vm43_vm3, 3, %v47_v9 }
  0x1e   :  { %55 = vst [vmem:[#allocation7 + $0x18] sm:$0xff] %v51_v11  ;;  %p122_p13 = por %p121_p12, %p120_p11 }
  0x20   :  { %p123_p0 = pnand %p122_p13, %p116_p10 }
  0x22   :  { %126 = shalt.err (!%p123_p0)
}
  0x23   :  { %65 = dma.vmem_to_hbm [thread:$0]  %s63_s0, 512, %s170_s2, [#allocation4]  }
  0x24   :  { %139 = dma.done.wait [#allocation4], 512  }
  0x25   :  { %140 = vsyncadd [#allocation4], 4294966784 }
  0x26   :  { %69 = vsyncpa [#allocation3], 1 }
  0x27   :  { %70 = vsyncpa [#allocation6], 1 }
  0x28   :  { %71 = vsyncpa [#allocation4], 1 }

</bundles_post_ra>
